<compile_context>
chip_gen: v5e
topology: v5e:2x2
jax: 0.10.0
libtpu: 0.0.40
codegen_flags: <defaults>
</compile_context>

<pallas_src>
import jax
import jax.numpy as jnp
from jax.experimental import pallas as pl
from jax.experimental.pallas import tpu as pltpu

config = {
    "batch_size": 1,
    "cModel_in_dim": 2,
    "cModel_hidd_dim": 32,
    "qModel_params_num": 12,
    "name": "circuit17",
}

IN_DIM = config["cModel_in_dim"]        # 2
HIDDEN_DIM = config["cModel_hidd_dim"]  # 32
OUT_DIM = config["qModel_params_num"]   # 12

LANE = 128            # TPU lane width
MAX_TB = 1024         # max batch-lanes per grid step (amortizes per-step overhead)

# Packed-parameter blob layout (single f32 [PARAM_ROWS, 128] array).
#   rows L1_ROW..L1_ROW+31, lane k (k < IN_DIM) : W1[k, :]  (fc1 weight, column-major)
#   rows L1_ROW..L1_ROW+31, lane IN_DIM         : b1
#   rows W2_ROW..W2_ROW+31, lanes 0..OUT_DIM-1  : W2  ([hidden, out])
#   rows B2_ROW..B2_ROW+11, lane 0              : b2
L1_ROW = 0
W2_ROW = HIDDEN_DIM                              # 32 (sublane-aligned)
B2_ROW = W2_ROW + HIDDEN_DIM                     # 64 (sublane-aligned)
PARAM_ROWS = ((B2_ROW + OUT_DIM + 7) // 8) * 8   # 80


def _mlp_kernel(xt_ref, p_ref, ot_ref):
    """One batch tile: xt_ref [IN_DIM, TB] -> ot_ref [OUT_DIM, TB]."""
    xt = xt_ref[...]                                              # [2, TB]

    # ---- fc1 + ReLU on the VPU: IN_DIM rank-1 broadcast FMAs ----------------
    h = p_ref[L1_ROW:L1_ROW + HIDDEN_DIM, IN_DIM:IN_DIM + 1]      # b1      [32, 1]
    for k in range(IN_DIM):
        w1_col = p_ref[L1_ROW:L1_ROW + HIDDEN_DIM, k:k + 1]       # W1[k,:] [32, 1]
        h = h + w1_col * xt[k:k + 1, :]                           # -> [32, TB]
    h = jnp.maximum(h, 0.0)                                       # ReLU     [32, TB]

    # ---- fc2 on VPU + XLU: OUT_DIM scaled cross-sublane reductions ----------
    w2 = p_ref[W2_ROW:W2_ROW + HIDDEN_DIM, 0:OUT_DIM]             # [32, 12]
    rows = [
        jnp.sum(w2[:, o:o + 1] * h, axis=0, keepdims=True)        # [1, TB]
        for o in range(OUT_DIM)
    ]
    b2 = p_ref[B2_ROW:B2_ROW + OUT_DIM, 0:1]                      # [12, 1]
    y = jnp.concatenate(rows, axis=0) + b2                        # [12, TB]
    ot_ref[...] = y.astype(ot_ref.dtype)


def pack_params(w1, b1, w2, b2):
    """Pack fc1/fc2 weights + biases into one (8,128)-aligned f32 blob.

    Expects [fan_in, fan_out] orientation (i.e. PyTorch `weight.T`):
      w1: [IN_DIM, HIDDEN_DIM]    b1: [HIDDEN_DIM] or [1, HIDDEN_DIM]
      w2: [HIDDEN_DIM, OUT_DIM]   b2: [OUT_DIM]    or [1, OUT_DIM]
    """
    w1 = jnp.asarray(w1, jnp.float32)
    w2 = jnp.asarray(w2, jnp.float32)
    if w1.shape != (IN_DIM, HIDDEN_DIM):
        raise ValueError(
            f"w1 must be [fan_in={IN_DIM}, fan_out={HIDDEN_DIM}] "
            f"(PyTorch fc1.weight.T); got {w1.shape}")
    if w2.shape != (HIDDEN_DIM, OUT_DIM):
        raise ValueError(
            f"w2 must be [fan_in={HIDDEN_DIM}, fan_out={OUT_DIM}] "
            f"(PyTorch fc2.weight.T); got {w2.shape}")
    b1 = jnp.asarray(b1, jnp.float32).reshape(HIDDEN_DIM)
    b2 = jnp.asarray(b2, jnp.float32).reshape(OUT_DIM)

    p = jnp.zeros((PARAM_ROWS, LANE), jnp.float32)
    p = p.at[L1_ROW:L1_ROW + HIDDEN_DIM, 0:IN_DIM].set(w1.T)       # W1 columns
    p = p.at[L1_ROW:L1_ROW + HIDDEN_DIM, IN_DIM].set(b1)           # b1 column
    p = p.at[W2_ROW:W2_ROW + HIDDEN_DIM, 0:OUT_DIM].set(w2)        # W2
    p = p.at[B2_ROW:B2_ROW + OUT_DIM, 0].set(b2)                   # b2 column
    return p


def _round_up(n, m):
    return ((n + m - 1) // m) * m


@jax.jit
def state_prep_cnetwork_forward(x, packed_params):
    """Pallas implementation of StatePrepCNetwork.forward.

    x:             [B, IN_DIM]        float
    packed_params: [PARAM_ROWS, 128]  float32 (see pack_params)
    returns:       [B, OUT_DIM]       float32
    """
    B = x.shape[0]
    # Batch lives on the lane axis: pick a lane tile and pad B up to it.
    tb = min(MAX_TB, _round_up(max(B, 1), LANE))
    b_pad = _round_up(B, tb)
    n_steps = b_pad // tb

    # Layout plumbing only: present a lane-major [IN_DIM, B_pad] slab.
    xt = jnp.pad(jnp.transpose(x.astype(jnp.float32)), ((0, 0), (0, b_pad - B)))

    flops = 2 * b_pad * (IN_DIM * HIDDEN_DIM + HIDDEN_DIM * OUT_DIM)
    bytes_accessed = 4 * (IN_DIM * b_pad + PARAM_ROWS * LANE + OUT_DIM * b_pad)

    yt = pl.pallas_call(
        _mlp_kernel,
        out_shape=jax.ShapeDtypeStruct((OUT_DIM, b_pad), jnp.float32),
        grid=(n_steps,),
        in_specs=[
            pl.BlockSpec((IN_DIM, tb), lambda i: (0, i)),
            # Constant index_map: the 40 KiB parameter blob is copied to VMEM
            # once and stays resident across the whole batch grid.
            pl.BlockSpec((PARAM_ROWS, LANE), lambda i: (0, 0)),
        ],
        out_specs=pl.BlockSpec((OUT_DIM, tb), lambda i: (0, i)),
        compiler_params=pltpu.CompilerParams(
            dimension_semantics=("parallel",),   # shard batch tiles across v7x's 2 TCs
            vmem_limit_bytes=32 * 1024 * 1024,   # well inside v7x's 64 MiB physical VMEM
        ),
        cost_estimate=pl.CostEstimate(
            flops=flops, transcendentals=0, bytes_accessed=bytes_accessed),
    )(xt, packed_params)

    return jnp.transpose(yt[:, :B])


def init_params(key):
    """nn.Linear-style init (uniform +/- 1/sqrt(fan_in)), stored as [fan_in, fan_out]."""
    k1, k2, k3, k4 = jax.random.split(key, 4)
    bound1 = 1.0 / jnp.sqrt(IN_DIM)
    bound2 = 1.0 / jnp.sqrt(HIDDEN_DIM)
    w1 = jax.random.uniform(k1, (IN_DIM, HIDDEN_DIM), jnp.float32, -bound1, bound1)
    b1 = jax.random.uniform(k2, (HIDDEN_DIM,), jnp.float32, -bound1, bound1)
    w2 = jax.random.uniform(k3, (HIDDEN_DIM, OUT_DIM), jnp.float32, -bound2, bound2)
    b2 = jax.random.uniform(k4, (OUT_DIM,), jnp.float32, -bound2, bound2)
    return w1, b1, w2, b2


if __name__ == "__main__":
    batch = 2

    key = jax.random.PRNGKey(0)
    kx, kp = jax.random.split(key)
    x = jax.random.normal(kx, (batch, IN_DIM), dtype=jnp.float32)
    w1, b1, w2, b2 = init_params(kp)

    # Pack once, outside the per-call path; reuse across every forward call.
    packed = jax.block_until_ready(pack_params(w1, b1, w2, b2))

    out = jax.block_until_ready(state_prep_cnetwork_forward(x, packed))

    # Reference check in plain JAX (same math as the PyTorch forward).
    ref = jnp.maximum(x @ w1 + b1, 0.0) @ w2 + b2
    assert out.shape == (batch, OUT_DIM)
    assert jnp.allclose(out, ref, atol=1e-5, rtol=1e-5), \
        float(jnp.max(jnp.abs(out - ref)))

    print("KERNEL_OK")
</pallas_src>

<mosaic_0001>
module attributes {stable_mosaic.version = 11 : i64} {
  func.func @_mlp_kernel(%arg0: i32, %arg1: memref<2x128xf32, #tpu.memory_space<vmem>>, %arg2: memref<80x128xf32, #tpu.memory_space<vmem>>, %arg3: memref<12x128xf32, #tpu.memory_space<vmem>>) attributes {dimension_semantics = [#tpu.dimension_semantics<parallel>], iteration_bounds = array<i64: 1>, scalar_prefetch = 0 : i64, scratch_operands = 0 : i64, tpu.core_type = #tpu.core_type<tc>, window_params = [{transform_indices = @transform_0, window_bounds = array<i64: 2, 128>}, {pipeline_mode = #tpu.pipeline_mode<synchronous>, transform_indices = @transform_1, window_bounds = array<i64: 80, 128>}, {transform_indices = @transform_2, window_bounds = array<i64: 12, 128>}]} {
    %c0 = arith.constant 0 : index
    %c0_0 = arith.constant 0 : index
    %0 = vector.load %arg1[%c0, %c0_0] : memref<2x128xf32, #tpu.memory_space<vmem>>, vector<2x128xf32>
    %c0_1 = arith.constant 0 : index
    %c2 = arith.constant 2 : index
    %1 = vector.load %arg2[%c0_1, %c2] : memref<80x128xf32, #tpu.memory_space<vmem>>, vector<32x1xf32>
    %c0_2 = arith.constant 0 : index
    %c0_3 = arith.constant 0 : index
    %2 = vector.load %arg2[%c0_2, %c0_3] : memref<80x128xf32, #tpu.memory_space<vmem>>, vector<32x1xf32>
    %3 = vector.extract_strided_slice %0 {offsets = [0, 0], sizes = [1, 128], strides = [1, 1]} : vector<2x128xf32> to vector<1x128xf32>
    %4 = vector.broadcast %2 : vector<32x1xf32> to vector<32x128xf32>
    %5 = vector.broadcast %3 : vector<1x128xf32> to vector<32x128xf32>
    %6 = arith.mulf %4, %5 : vector<32x128xf32>
    %7 = vector.broadcast %1 : vector<32x1xf32> to vector<32x128xf32>
    %8 = arith.addf %7, %6 : vector<32x128xf32>
    %c0_4 = arith.constant 0 : index
    %c1 = arith.constant 1 : index
    %9 = vector.load %arg2[%c0_4, %c1] : memref<80x128xf32, #tpu.memory_space<vmem>>, vector<32x1xf32>
    %10 = vector.extract_strided_slice %0 {offsets = [1, 0], sizes = [1, 128], strides = [1, 1]} : vector<2x128xf32> to vector<1x128xf32>
    %11 = vector.broadcast %9 : vector<32x1xf32> to vector<32x128xf32>
    %12 = vector.broadcast %10 : vector<1x128xf32> to vector<32x128xf32>
    %13 = arith.mulf %11, %12 : vector<32x128xf32>
    %14 = arith.addf %8, %13 : vector<32x128xf32>
    %cst = arith.constant 0.000000e+00 : f32
    %15 = vector.broadcast %cst : f32 to vector<32x128xf32>
    %16 = arith.maximumf %14, %15 : vector<32x128xf32>
    %c32 = arith.constant 32 : index
    %c0_5 = arith.constant 0 : index
    %17 = vector.load %arg2[%c32, %c0_5] : memref<80x128xf32, #tpu.memory_space<vmem>>, vector<32x12xf32>
    %18 = vector.extract_strided_slice %17 {offsets = [0, 0], sizes = [32, 1], strides = [1, 1]} : vector<32x12xf32> to vector<32x1xf32>
    %19 = vector.broadcast %18 : vector<32x1xf32> to vector<32x128xf32>
    %20 = arith.mulf %19, %16 : vector<32x128xf32>
    %cst_6 = arith.constant dense<0.000000e+00> : vector<128xf32>
    %21 = vector.multi_reduction <add>, %20, %cst_6 [0] : vector<32x128xf32> to vector<128xf32>
    %22 = vector.shape_cast %21 : vector<128xf32> to vector<1x128xf32>
    %23 = vector.extract_strided_slice %17 {offsets = [0, 1], sizes = [32, 1], strides = [1, 1]} : vector<32x12xf32> to vector<32x1xf32>
    %24 = vector.broadcast %23 : vector<32x1xf32> to vector<32x128xf32>
    %25 = arith.mulf %24, %16 : vector<32x128xf32>
    %cst_7 = arith.constant dense<0.000000e+00> : vector<128xf32>
    %26 = vector.multi_reduction <add>, %25, %cst_7 [0] : vector<32x128xf32> to vector<128xf32>
    %27 = vector.shape_cast %26 : vector<128xf32> to vector<1x128xf32>
    %28 = vector.extract_strided_slice %17 {offsets = [0, 2], sizes = [32, 1], strides = [1, 1]} : vector<32x12xf32> to vector<32x1xf32>
    %29 = vector.broadcast %28 : vector<32x1xf32> to vector<32x128xf32>
    %30 = arith.mulf %29, %16 : vector<32x128xf32>
    %cst_8 = arith.constant dense<0.000000e+00> : vector<128xf32>
    %31 = vector.multi_reduction <add>, %30, %cst_8 [0] : vector<32x128xf32> to vector<128xf32>
    %32 = vector.shape_cast %31 : vector<128xf32> to vector<1x128xf32>
    %33 = vector.extract_strided_slice %17 {offsets = [0, 3], sizes = [32, 1], strides = [1, 1]} : vector<32x12xf32> to vector<32x1xf32>
    %34 = vector.broadcast %33 : vector<32x1xf32> to vector<32x128xf32>
    %35 = arith.mulf %34, %16 : vector<32x128xf32>
    %cst_9 = arith.constant dense<0.000000e+00> : vector<128xf32>
    %36 = vector.multi_reduction <add>, %35, %cst_9 [0] : vector<32x128xf32> to vector<128xf32>
    %37 = vector.shape_cast %36 : vector<128xf32> to vector<1x128xf32>
    %38 = vector.extract_strided_slice %17 {offsets = [0, 4], sizes = [32, 1], strides = [1, 1]} : vector<32x12xf32> to vector<32x1xf32>
    %39 = vector.broadcast %38 : vector<32x1xf32> to vector<32x128xf32>
    %40 = arith.mulf %39, %16 : vector<32x128xf32>
    %cst_10 = arith.constant dense<0.000000e+00> : vector<128xf32>
    %41 = vector.multi_reduction <add>, %40, %cst_10 [0] : vector<32x128xf32> to vector<128xf32>
    %42 = vector.shape_cast %41 : vector<128xf32> to vector<1x128xf32>
    %43 = vector.extract_strided_slice %17 {offsets = [0, 5], sizes = [32, 1], strides = [1, 1]} : vector<32x12xf32> to vector<32x1xf32>
    %44 = vector.broadcast %43 : vector<32x1xf32> to vector<32x128xf32>
    %45 = arith.mulf %44, %16 : vector<32x128xf32>
    %cst_11 = arith.constant dense<0.000000e+00> : vector<128xf32>
    %46 = vector.multi_reduction <add>, %45, %cst_11 [0] : vector<32x128xf32> to vector<128xf32>
    %47 = vector.shape_cast %46 : vector<128xf32> to vector<1x128xf32>
    %48 = vector.extract_strided_slice %17 {offsets = [0, 6], sizes = [32, 1], strides = [1, 1]} : vector<32x12xf32> to vector<32x1xf32>
    %49 = vector.broadcast %48 : vector<32x1xf32> to vector<32x128xf32>
    %50 = arith.mulf %49, %16 : vector<32x128xf32>
    %cst_12 = arith.constant dense<0.000000e+00> : vector<128xf32>
    %51 = vector.multi_reduction <add>, %50, %cst_12 [0] : vector<32x128xf32> to vector<128xf32>
    %52 = vector.shape_cast %51 : vector<128xf32> to vector<1x128xf32>
    %53 = vector.extract_strided_slice %17 {offsets = [0, 7], sizes = [32, 1], strides = [1, 1]} : vector<32x12xf32> to vector<32x1xf32>
    %54 = vector.broadcast %53 : vector<32x1xf32> to vector<32x128xf32>
    %55 = arith.mulf %54, %16 : vector<32x128xf32>
    %cst_13 = arith.constant dense<0.000000e+00> : vector<128xf32>
    %56 = vector.multi_reduction <add>, %55, %cst_13 [0] : vector<32x128xf32> to vector<128xf32>
    %57 = vector.shape_cast %56 : vector<128xf32> to vector<1x128xf32>
    %58 = vector.extract_strided_slice %17 {offsets = [0, 8], sizes = [32, 1], strides = [1, 1]} : vector<32x12xf32> to vector<32x1xf32>
    %59 = vector.broadcast %58 : vector<32x1xf32> to vector<32x128xf32>
    %60 = arith.mulf %59, %16 : vector<32x128xf32>
    %cst_14 = arith.constant dense<0.000000e+00> : vector<128xf32>
    %61 = vector.multi_reduction <add>, %60, %cst_14 [0] : vector<32x128xf32> to vector<128xf32>
    %62 = vector.shape_cast %61 : vector<128xf32> to vector<1x128xf32>
    %63 = vector.extract_strided_slice %17 {offsets = [0, 9], sizes = [32, 1], strides = [1, 1]} : vector<32x12xf32> to vector<32x1xf32>
    %64 = vector.broadcast %63 : vector<32x1xf32> to vector<32x128xf32>
    %65 = arith.mulf %64, %16 : vector<32x128xf32>
    %cst_15 = arith.constant dense<0.000000e+00> : vector<128xf32>
    %66 = vector.multi_reduction <add>, %65, %cst_15 [0] : vector<32x128xf32> to vector<128xf32>
    %67 = vector.shape_cast %66 : vector<128xf32> to vector<1x128xf32>
    %68 = vector.extract_strided_slice %17 {offsets = [0, 10], sizes = [32, 1], strides = [1, 1]} : vector<32x12xf32> to vector<32x1xf32>
    %69 = vector.broadcast %68 : vector<32x1xf32> to vector<32x128xf32>
    %70 = arith.mulf %69, %16 : vector<32x128xf32>
    %cst_16 = arith.constant dense<0.000000e+00> : vector<128xf32>
    %71 = vector.multi_reduction <add>, %70, %cst_16 [0] : vector<32x128xf32> to vector<128xf32>
    %72 = vector.shape_cast %71 : vector<128xf32> to vector<1x128xf32>
    %73 = vector.extract_strided_slice %17 {offsets = [0, 11], sizes = [32, 1], strides = [1, 1]} : vector<32x12xf32> to vector<32x1xf32>
    %74 = vector.broadcast %73 : vector<32x1xf32> to vector<32x128xf32>
    %75 = arith.mulf %74, %16 : vector<32x128xf32>
    %cst_17 = arith.constant dense<0.000000e+00> : vector<128xf32>
    %76 = vector.multi_reduction <add>, %75, %cst_17 [0] : vector<32x128xf32> to vector<128xf32>
    %77 = vector.shape_cast %76 : vector<128xf32> to vector<1x128xf32>
    %c64 = arith.constant 64 : index
    %c0_18 = arith.constant 0 : index
    %78 = vector.load %arg2[%c64, %c0_18] : memref<80x128xf32, #tpu.memory_space<vmem>>, vector<12x1xf32>
    %79 = tpu.concatenate %22, %27, %32, %37, %42, %47, %52, %57, %62, %67, %72, %77 in 0 : vector<1x128xf32>, vector<1x128xf32>, vector<1x128xf32>, vector<1x128xf32>, vector<1x128xf32>, vector<1x128xf32>, vector<1x128xf32>, vector<1x128xf32>, vector<1x128xf32>, vector<1x128xf32>, vector<1x128xf32>, vector<1x128xf32> -> vector<12x128xf32>
    %80 = vector.broadcast %78 : vector<12x1xf32> to vector<12x128xf32>
    %81 = arith.addf %79, %80 : vector<12x128xf32>
    %c0_19 = arith.constant 0 : index
    %c0_20 = arith.constant 0 : index
    %82 = vector.load %arg3[%c0_19, %c0_20] : memref<12x128xf32, #tpu.memory_space<vmem>>, vector<12x128xf32>
    tpu.vector_store %arg3[%c0_19, %c0_20], %81 {strides = array<i32>} : memref<12x128xf32, #tpu.memory_space<vmem>>, vector<12x128xf32>,
    return
  }
  func.func @transform_0(%arg0: i32) -> (i32, i32) {
    %c0_i32 = arith.constant 0 : i32
    %c0_i32_0 = arith.constant 0 : i32
    return %c0_i32, %arg0 : i32, i32
  }
  func.func @transform_1(%arg0: i32) -> (i32, i32) {
    %c0_i32 = arith.constant 0 : i32
    %c0_i32_0 = arith.constant 0 : i32
    %c0_i32_1 = arith.constant 0 : i32
    return %c0_i32, %c0_i32_0 : i32, i32
  }
  func.func @transform_2(%arg0: i32) -> (i32, i32) {
    %c0_i32 = arith.constant 0 : i32
    %c0_i32_0 = arith.constant 0 : i32
    return %c0_i32, %arg0 : i32, i32
  }
}

</mosaic_0001>

<bundles_post_ra>
// kernel: state_prep_cnetwork_forward.1
= control target key start
LH: loop header
LB: loop body
LE: loop exit
PB: predicated region body
PF: predicated region fallthrough
CT: control target
= control target key end

     0   :  { %7 = vsyncpa [#allocation3], 0  ;;  %s585_s12 = smov [#allocation2]   ;;  %s586_s14 = smov 128   ;;  %s769_s0 = inlined_call_operand.vmem [shape: f32[2,128], index: 0, kind: input, shape index: {}]   ;;  %s770_s1 = inlined_call_operand.hbm [shape: f32[80,128], index: 1, kind: input, shape index: {}]   ;;  %s771_s2 = inlined_call_operand.vmem [shape: f32[12,128], index: 2, kind: output, shape index: {}]  }
   0x1   :  { %s14_s11 = sshll.u32 %s770_s1, 4  ;;  %s16_s13 = sshll.u32 %s585_s12, 4  ;;  %s15_s11 = int_to_ptr.hbm [resolvable:$true] %s14_s11  ;;  %s17_s13 = int_to_ptr.vmem [resolvable:$true] %s16_s13 }
   0x2   :  { %s587_s15 = smov 8  }
   0x3   :  { %22 = dma.hbm_to_vmem [thread:$0]  %s15_s11, 1280, %s17_s13, [#allocation3], %s586_s14, %s586_s14, %s587_s15  }
   0x4   :  { %583 = dma.done.wait [#allocation3], 1280  }
   0x5   :  { %584 = vsyncadd [#allocation3], 4294966016  ;;  %v588_v0 = vmov 2   ;;  %v589_v1 = vmov 0   ;;  %v30_v2 = vld [vmem:[#allocation2 + $0x10] sm:$0xff]  ;;  %v28_v3 = vld [vmem:[#allocation2] sm:$0xff] }
   0x6   :  { %517 = vset.pattern.permute.xlu2 %v588_v0  ;;  %516 = vset.pattern.permute.xlu1 %v589_v1  ;;  %v31_v4 = vld [vmem:[#allocation2 + $0x18] sm:$0xff]  ;;  %v29_v5 = vld [vmem:[#allocation2 + $0x8] sm:$0xff]  ;;  %v590_v6 = vmov 1   ;;  %v620_v7 = vld [vmem:[#allocation2 + $0x20] sm:$0xff]  ;;  %v591_v11 = vmov 3   ;;  %v592_v12 = vmov 5  }
   0x7   :  { %515 = vset.pattern.permute.xlu0 %v589_v1  ;;  %44 = vperm.xlu1 %516, %v30_v2   ;;  %v623_v8 = vld [vmem:[#allocation2 + $0x38] sm:$0xff]  ;;  %v625_v9 = vld [vmem:[#allocation2 + $0x28] sm:$0xff]  ;;  %v632_v10 = vld [vmem:[#allocation2 + $0x30] sm:$0xff]  ;;  %v593_v13 = vmov 6   ;;  %v594_v14 = vmov 4   ;;  %v595_v15 = vmov 7  }
   0x8   :  { %58 = vperm.xlu2 %517, %v28_v3   ;;  %34 = vperm.xlu0 %515, %v28_v3   ;;  %v596_v17 = vmov 8   ;;  %v597_v19 = vmov 10   ;;  %v27_v21 = vld [vmem:[%s769_s0] sm:$0x3]  ;;  %v598_v25 = vmov 11   ;;  %v599_v61 = vmov 9  }
   0x9   :  { %v661_v22 = vperm.slane %v27_v21, 1  ;;  %v52_v23 = vperm.slane %v27_v21, 0  ;;  %vm464_vm0 = vcmask 1040384   ;;  %vm466_vm1 = vcmask 1041408  }
   0xa   :  { %vm468_vm2 = vcmask 1042432   ;;  %vm470_vm3 = vcmask 1043456   ;;  %vm472_vm4 = vcmask 1044480   ;;  %vm474_vm5 = vcmask 1045504  }
   0xb   :  { %vm476_vm6 = vcmask 1046528  }
   0xf   :  { %49 = vperm.xlu1 %516, %v31_v4  }
  0x10   :  { %62 = vperm.xlu2 %517, %v29_v5   ;;  %39 = vperm.xlu0 %515, %v29_v5  }
  0x17   :  { %518 = vset.pattern.permute.xlu1 %v588_v0 }
  0x18   :  { %519 = vset.pattern.permute.xlu2 %v590_v6  ;;  %521 = vset.pattern.permute.xlu0 %v590_v6 }
  0x19   :  { %70 = vperm.xlu1 %518, %v31_v4   ;;  %78 = vperm.xlu2 %519, %v28_v3  }
  0x1a   :  { %90 = vperm.xlu0 %521, %v31_v4  }
  0x21   :  { %520 = vset.pattern.permute.xlu1 %v590_v6  ;;  %86 = vperm.xlu2 %519, %v30_v2  }
  0x22   :  { %144 = vperm.xlu0 %521, %v620_v7   ;;  %82 = vperm.xlu1 %520, %v29_v5  }
  0x29   :  { %523 = vset.pattern.permute.xlu2 %v589_v1 }
  0x2a   :  { %156 = vperm.xlu0 %521, %v623_v8   ;;  %522 = vset.pattern.permute.xlu1 %v589_v1 }
  0x2b   :  { %117 = vperm.xlu2 %523, %v625_v9   ;;  %112 = vperm.xlu1 %522, %v620_v7  }
  0x32   :  { %526 = vset.pattern.permute.xlu0 %v588_v0 }
  0x33   :  { %127 = vperm.xlu2 %523, %v623_v8   ;;  %66 = vperm.xlu0 %526, %v30_v2  }
  0x34   :  { %122 = vperm.xlu1 %522, %v632_v10  }
  0x3b   :  { %525 = vset.pattern.permute.xlu2 %v590_v6  ;;  %181 = vperm.xlu0 %526, %v632_v10  }
  0x3c   :  { %524 = vset.pattern.permute.xlu1 %v590_v6  ;;  %152 = vperm.xlu2 %525, %v632_v10  }
  0x3d   :  { %148 = vperm.xlu1 %524, %v625_v9  }
  0x43   :  { %531 = vset.pattern.permute.xlu0 %v591_v11 }
  0x44   :  { %528 = vset.pattern.permute.xlu2 %v588_v0  ;;  %214 = vperm.xlu0 %531, %v623_v8  }
  0x45   :  { %527 = vset.pattern.permute.xlu1 %v588_v0  ;;  %177 = vperm.xlu2 %528, %v625_v9  }
  0x46   :  { %173 = vperm.xlu1 %527, %v620_v7  }
  0x4c   :  { %534 = vset.pattern.permute.xlu0 %v592_v12 }
  0x4d   :  { %529 = vset.pattern.permute.xlu2 %v591_v11  ;;  %260 = vperm.xlu0 %534, %v620_v7  }
  0x4e   :  { %185 = vperm.xlu1 %527, %v623_v8   ;;  %202 = vperm.xlu2 %529, %v620_v7  }
  0x55   :  { %538 = vset.pattern.permute.xlu0 %v593_v13 }
  0x56   :  { %530 = vset.pattern.permute.xlu1 %v591_v11  ;;  %210 = vperm.xlu2 %529, %v632_v10  }
  0x57   :  { %293 = vperm.xlu0 %538, %v625_v9   ;;  %206 = vperm.xlu1 %530, %v625_v9  }
  0x5e   :  { %533 = vset.pattern.permute.xlu2 %v594_v14 }
  0x5f   :  { %542 = vset.pattern.permute.xlu0 %v595_v15  ;;  %532 = vset.pattern.permute.xlu1 %v594_v14 }
  0x60   :  { %235 = vperm.xlu2 %533, %v625_v9   ;;  %326 = vperm.xlu0 %542, %v632_v10  }
  0x61   :  { %231 = vperm.xlu1 %532, %v620_v7  }
  0x62   :  { %v59_v16 = vpop.permute.xlu2 %58 }
  0x68   :  { %243 = vperm.xlu2 %533, %v623_v8   ;;  %545 = vset.pattern.permute.xlu0 %v596_v17 }
  0x69   :  { %239 = vperm.xlu1 %532, %v632_v10   ;;  %359 = vperm.xlu0 %545, %v623_v8  }
  0x6a   :  { %v63_v18 = vpop.permute.xlu2 %62 }
  0x70   :  { %536 = vset.pattern.permute.xlu2 %v592_v12 }
  0x71   :  { %535 = vset.pattern.permute.xlu1 %v592_v12  ;;  %268 = vperm.xlu2 %536, %v632_v10  }
  0x72   :  { %548 = vset.pattern.permute.xlu0 %v597_v19  ;;  %264 = vperm.xlu1 %535, %v625_v9  }
  0x73   :  { %405 = vperm.xlu0 %548, %v620_v7   ;;  %v79_v20 = vpop.permute.xlu2 %78 }
  0x74   :  { %v94_v27 = vmul.f32 %v661_v22, %v79_v20 }
  0x79   :  { %537 = vset.pattern.permute.xlu2 %v593_v13  ;;  %v45_v24 = vpop.permute.xlu1 %44 }
  0x7a   :  { %272 = vperm.xlu1 %535, %v623_v8   ;;  %289 = vperm.xlu2 %537, %v620_v7   ;;  %v35_v26 = vpop.permute.xlu0 %34  ;;  %v55_v60 = vmul.f32 %v52_v23, %v45_v24 }
  0x7b   :  { %553 = vset.pattern.permute.xlu0 %v598_v25  ;;  %v53_v28 = vmul.f32 %v52_v23, %v35_v26  ;;  %v87_v29 = vpop.permute.xlu2 %86 }
  0x7c   :  { %442 = vperm.xlu0 %553, %v632_v10   ;;  %v96_v63 = vmul.f32 %v661_v22, %v87_v29 }
  0x7d   :  { %v73_v30 = vadd.f32 %v59_v16, %v53_v28 }
  0x7f   :  { %v98_v31 = vadd.f32 %v94_v27, %v73_v30 }
  0x81   :  { %v50_v32 = vpop.permute.xlu1 %49  ;;  %v684_v54 = vmax.f32 %v98_v31, 0.0 }
  0x82   :  { %539 = vset.pattern.permute.xlu1 %v593_v13  ;;  %301 = vperm.xlu2 %537, %v623_v8   ;;  %v40_v33 = vpop.permute.xlu0 %39  ;;  %v56_v37 = vmul.f32 %v52_v23, %v50_v32 }
  0x83   :  { %297 = vperm.xlu1 %539, %v632_v10   ;;  %v54_v34 = vmul.f32 %v52_v23, %v40_v33 }
  0x84   :  { %558 = vset.pattern.permute.xlu0 %v589_v1 }
  0x85   :  { %v118_v35 = vpop.permute.xlu2 %117  ;;  %v74_v36 = vadd.f32 %v63_v18, %v54_v34 }
  0x8a   :  { %541 = vset.pattern.permute.xlu2 %v595_v15 }
  0x8b   :  { %540 = vset.pattern.permute.xlu1 %v595_v15  ;;  %322 = vperm.xlu2 %541, %v625_v9   ;;  %v71_v38 = vpop.permute.xlu1 %70 }
  0x8c   :  { %318 = vperm.xlu1 %540, %v620_v7   ;;  %v76_v39 = vadd.f32 %v71_v38, %v56_v37  ;;  %v91_v40 = vpop.permute.xlu0 %90 }
  0x8d   :  { %v97_v41 = vmul.f32 %v661_v22, %v91_v40  ;;  %v128_v42 = vpop.permute.xlu2 %127 }
  0x8f   :  { %v101_v43 = vadd.f32 %v97_v41, %v76_v39 }
  0x91   :  { %v674_v44 = vmax.f32 %v101_v43, 0.0 }
  0x93   :  { %v133_v45 = vmul.f32 %v128_v42, %v674_v44  ;;  %543 = vset.pattern.permute.xlu2 %v596_v17 }
  0x94   :  { %330 = vperm.xlu1 %540, %v623_v8   ;;  %347 = vperm.xlu2 %543, %v620_v7   ;;  %v145_v46 = vpop.permute.xlu0 %144  ;;  %v83_v47 = vpop.permute.xlu1 %82 }
  0x95   :  { %v95_v48 = vmul.f32 %v661_v22, %v83_v47  ;;  %v159_v15 = vmul.f32 %v145_v46, %v684_v54 }
  0x96   :  { %v153_v49 = vpop.permute.xlu2 %152 }
  0x97   :  { %v99_v50 = vadd.f32 %v95_v48, %v74_v36 }
  0x99   :  { %v680_v51 = vmax.f32 %v99_v50, 0.0 }
  0x9b   :  { %v131_v53 = vmul.f32 %v118_v35, %v680_v51 }
  0x9c   :  { %544 = vset.pattern.permute.xlu1 %v596_v17  ;;  %355 = vperm.xlu2 %543, %v632_v10   ;;  %v157_v52 = vpop.permute.xlu0 %156 }
  0x9d   :  { %351 = vperm.xlu1 %544, %v625_v9   ;;  %v113_v55 = vpop.permute.xlu1 %112  ;;  %v162_v23 = vmul.f32 %v157_v52, %v674_v44 }
  0x9e   :  { %v130_v56 = vmul.f32 %v113_v55, %v684_v54 }
  0x9f   :  { %v178_v57 = vpop.permute.xlu2 %177 }
  0xa0   :  { %v189_v58 = vmul.f32 %v178_v57, %v680_v51  ;;  %v134_v59 = vadd.f32 %v131_v53, %v130_v56 }
  0xa4   :  { %547 = vset.pattern.permute.xlu2 %v599_v61 }
  0xa5   :  { %546 = vset.pattern.permute.xlu1 %v599_v61  ;;  %380 = vperm.xlu2 %547, %v625_v9   ;;  %v67_v62 = vpop.permute.xlu0 %66 }
  0xa6   :  { %376 = vperm.xlu1 %546, %v620_v7   ;;  %v75_v0 = vadd.f32 %v67_v62, %v55_v60  ;;  %v123_v2 = vpop.permute.xlu1 %122 }
  0xa8   :  { %v100_v3 = vadd.f32 %v96_v63, %v75_v0  ;;  %v203_v4 = vpop.permute.xlu2 %202 }
  0xa9   :  { %v693_v5 = vmul.f32 %v203_v4, %v684_v54 }
  0xaa   :  { %v695_v6 = vmax.f32 %v100_v3, 0.0 }
  0xac   :  { %v132_v11 = vmul.f32 %v123_v2, %v695_v6  ;;  %v161_v12 = vmul.f32 %v153_v49, %v695_v6  ;;  %v462_v2 = vld [vmem:[#allocation2 + $0x40] sm:$0xff] }
  0xad   :  { %388 = vperm.xlu2 %547, %v623_v8   ;;  %v182_v26 = vpop.permute.xlu0 %181 }
  0xae   :  { %v135_v13 = vadd.f32 %v134_v59, %v132_v11  ;;  %384 = vperm.xlu1 %546, %v632_v10   ;;  %v190_v36 = vmul.f32 %v182_v26, %v695_v6 }
  0xaf   :  { %v149_v14 = vpop.permute.xlu1 %148 }
  0xb0   :  { %v136_v16 = vadd.f32 %v135_v13, %v133_v45  ;;  %v160_v17 = vmul.f32 %v149_v14, %v680_v51  ;;  %v211_v18 = vpop.permute.xlu2 %210 }
  0xb1   :  { %v219_v20 = vmul.f32 %v211_v18, %v695_v6 }
  0xb2   :  { %v137_v21 = vrot.slane %v136_v16, 4  ;;  %v163_v22 = vadd.f32 %v160_v17, %v159_v15 }
  0xb4   :  { %v138_v24 = vadd.f32 %v137_v21, %v136_v16  ;;  %v164_v27 = vadd.f32 %v163_v22, %v161_v12  ;;  %v463_v12 = vld [vmem:[#allocation2 + $0x48] sm:$0xf] }
  0xb5   :  { %550 = vset.pattern.permute.xlu2 %v598_v25 }
  0xb6   :  { %v139_v28 = vrot.slane %v138_v24, 2  ;;  %v165_v29 = vadd.f32 %v164_v27, %v162_v23  ;;  %549 = vset.pattern.permute.xlu1 %v597_v19  ;;  %434 = vperm.xlu2 %550, %v620_v7   ;;  %v215_v43 = vpop.permute.xlu0 %214 }
  0xb7   :  { %409 = vperm.xlu1 %549, %v625_v9  }
  0xb8   :  { %v166_v30 = vrot.slane %v165_v29, 4  ;;  %v174_v31 = vpop.permute.xlu1 %173  ;;  %v140_v33 = vadd.f32 %v139_v28, %v138_v24 }
  0xb9   :  { %v188_v32 = vmul.f32 %v174_v31, %v684_v54 }
  0xba   :  { %v167_v34 = vadd.f32 %v166_v30, %v165_v29  ;;  %v236_v35 = vpop.permute.xlu2 %235  ;;  %v141_v41 = vrot.slane %v140_v33, 1 }
  0xbb   :  { %v192_v37 = vadd.f32 %v189_v58, %v188_v32  ;;  %v247_v38 = vmul.f32 %v236_v35, %v680_v51 }
  0xbc   :  { %v168_v39 = vrot.slane %v167_v34, 2  ;;  %v142_v47 = vadd.f32 %v141_v41, %v140_v33 }
  0xbd   :  { %v193_v40 = vadd.f32 %v192_v37, %v190_v36 }
  0xbe   :  { %v169_v42 = vadd.f32 %v168_v39, %v167_v34  ;;  %552 = vset.pattern.permute.xlu2 %v597_v19 }
  0xbf   :  { %551 = vset.pattern.permute.xlu1 %v598_v25  ;;  %413 = vperm.xlu2 %552, %v632_v10   ;;  %v261_v10 = vpop.permute.xlu0 %260 }
  0xc0   :  { %v170_v7 = vrot.slane %v169_v42, 1  ;;  %438 = vperm.xlu1 %551, %v625_v9   ;;  %v186_v45 = vpop.permute.xlu1 %185  ;;  %v275_v34 = vmul.f32 %v261_v10, %v684_v54 }
  0xc1   :  { %v191_v46 = vmul.f32 %v186_v45, %v674_v44 }
  0xc2   :  { %v171_v48 = vadd.f32 %v170_v7, %v169_v42  ;;  %v244_v49 = vpop.permute.xlu2 %243 }
  0xc3   :  { %v194_v50 = vadd.f32 %v193_v40, %v191_v46  ;;  %v249_v52 = vmul.f32 %v244_v49, %v674_v44 }
  0xc4   :  { %v465_v53 = vsel %vm464_vm0, %v142_v47, %v171_v48 }
  0xc5   :  { %v195_v55 = vrot.slane %v194_v50, 4 }
  0xc7   :  { %v196_v56 = vadd.f32 %v195_v55, %v194_v50  ;;  %555 = vset.pattern.permute.xlu2 %v598_v25  ;;  %v220_v25 = vmul.f32 %v215_v43, %v674_v44 }
  0xc8   :  { %554 = vset.pattern.permute.xlu1 %v597_v19  ;;  %446 = vperm.xlu2 %555, %v623_v8  }
  0xc9   :  { %v197_v9 = vrot.slane %v196_v56, 2  ;;  %417 = vperm.xlu1 %554, %v623_v8   ;;  %v207_v57 = vpop.permute.xlu1 %206  ;;  %v294_v4 = vpop.permute.xlu0 %293 }
  0xca   :  { %v218_v58 = vmul.f32 %v207_v57, %v680_v51  ;;  %v305_v16 = vmul.f32 %v294_v4, %v680_v51 }
  0xcb   :  { %v198_v59 = vadd.f32 %v197_v9, %v196_v56  ;;  %v269_v60 = vpop.permute.xlu2 %268 }
  0xcc   :  { %v221_v61 = vadd.f32 %v218_v58, %v693_v5  ;;  %v277_v62 = vmul.f32 %v269_v60, %v695_v6 }
  0xcd   :  { %v199_v63 = vrot.slane %v198_v59, 1 }
  0xce   :  { %v222_v0 = vadd.f32 %v221_v61, %v219_v20 }
  0xcf   :  { %v200_v19 = vadd.f32 %v199_v63, %v198_v59 }
  0xd0   :  { %v223_v3 = vadd.f32 %v222_v0, %v220_v25  ;;  %557 = vset.pattern.permute.xlu2 %v589_v1 }
  0xd1   :  { %556 = vset.pattern.permute.xlu1 %v589_v1  ;;  %v467_v8 = vsel %vm466_vm1, %v465_v53, %v200_v19  ;;  %488 = vperm.xlu2 %557, %v463_v12  }
  0xd2   :  { %v224_v11 = vrot.slane %v223_v3, 4  ;;  %483 = vperm.xlu1 %556, %v462_v2   ;;  %v327_v61 = vpop.permute.xlu0 %326 }
  0xd3   :  { %v232_v5 = vpop.permute.xlu1 %231  ;;  %v335_v2 = vmul.f32 %v327_v61, %v695_v6 }
  0xd4   :  { %v225_v13 = vadd.f32 %v224_v11, %v223_v3  ;;  %v246_v14 = vmul.f32 %v232_v5, %v684_v54  ;;  %v290_v15 = vpop.permute.xlu2 %289 }
  0xd5   :  { %v304_v17 = vmul.f32 %v290_v15, %v684_v54 }
  0xd6   :  { %v226_v18 = vrot.slane %v225_v13, 2  ;;  %v250_v20 = vadd.f32 %v247_v38, %v246_v14 }
  0xd7   :  { %v308_v21 = vadd.f32 %v305_v16, %v304_v17 }
  0xd8   :  { %v227_v1 = vadd.f32 %v226_v18, %v225_v13 }
  0xda   :  { %v228_v22 = vrot.slane %v227_v1, 1 }
  0xdb   :  { %v240_v23 = vpop.permute.xlu1 %239 }
  0xdc   :  { %v229_v24 = vadd.f32 %v228_v22, %v227_v1  ;;  %v248_v26 = vmul.f32 %v240_v23, %v695_v6  ;;  %v302_v31 = vpop.permute.xlu2 %301 }
  0xdd   :  { %v307_v56 = vmul.f32 %v302_v31, %v674_v44 }
  0xde   :  { %v251_v27 = vadd.f32 %v250_v20, %v248_v26  ;;  %v469_v28 = vsel %vm468_vm2, %v467_v8, %v229_v24  ;;  %v360_v24 = vpop.permute.xlu0 %359 }
  0xe0   :  { %v252_v29 = vadd.f32 %v251_v27, %v249_v52 }
  0xe2   :  { %v253_v30 = vrot.slane %v252_v29, 4 }
  0xe4   :  { %v254_v32 = vadd.f32 %v253_v30, %v252_v29  ;;  %v265_v33 = vpop.permute.xlu1 %264  ;;  %v365_v30 = vmul.f32 %v360_v24, %v674_v44 }
  0xe5   :  { %v276_v35 = vmul.f32 %v265_v33, %v680_v51  ;;  %v323_v43 = vpop.permute.xlu2 %322 }
  0xe6   :  { %v255_v36 = vrot.slane %v254_v32, 2  ;;  %v334_v25 = vmul.f32 %v323_v43, %v680_v51 }
  0xe7   :  { %v279_v37 = vadd.f32 %v276_v35, %v275_v34 }
  0xe8   :  { %v256_v38 = vadd.f32 %v255_v36, %v254_v32 }
  0xe9   :  { %v280_v39 = vadd.f32 %v279_v37, %v277_v62 }
  0xea   :  { %v257_v40 = vrot.slane %v256_v38, 1 }
  0xec   :  { %v258_v41 = vadd.f32 %v257_v40, %v256_v38  ;;  %v273_v42 = vpop.permute.xlu1 %272 }
  0xed   :  { %v278_v7 = vmul.f32 %v273_v42, %v674_v44 }
  0xee   :  { %v471_v45 = vsel %vm470_vm3, %v469_v28, %v258_v41  ;;  %v348_v55 = vpop.permute.xlu2 %347 }
  0xef   :  { %v281_v46 = vadd.f32 %v280_v39, %v278_v7  ;;  %v362_v22 = vmul.f32 %v348_v55, %v684_v54 }
  0xf1   :  { %v282_v47 = vrot.slane %v281_v46, 4 }
  0xf3   :  { %v283_v48 = vadd.f32 %v282_v47, %v281_v46 }
  0xf5   :  { %v284_v49 = vrot.slane %v283_v48, 2  ;;  %v298_v50 = vpop.permute.xlu1 %297 }
  0xf6   :  { %v306_v52 = vmul.f32 %v298_v50, %v695_v6  ;;  %v356_v3 = vpop.permute.xlu2 %355 }
  0xf7   :  { %v285_v53 = vadd.f32 %v284_v49, %v283_v48  ;;  %v364_v27 = vmul.f32 %v356_v3, %v695_v6  ;;  %v406_v49 = vpop.permute.xlu0 %405 }
  0xf8   :  { %v309_v10 = vadd.f32 %v308_v21, %v306_v52 }
  0xf9   :  { %v286_v9 = vrot.slane %v285_v53, 1 }
  0xfa   :  { %v310_v57 = vadd.f32 %v309_v10, %v307_v56  ;;  %v420_v10 = vmul.f32 %v406_v49, %v684_v54 }
  0xfb   :  { %v287_v58 = vadd.f32 %v286_v9, %v285_v53 }
  0xfc   :  { %v311_v59 = vrot.slane %v310_v57, 4 }
  0xfd   :  { %v473_v60 = vsel %vm472_vm4, %v471_v45, %v287_v58 }
  0xfe   :  { %v312_v62 = vadd.f32 %v311_v59, %v310_v57  ;;  %v319_v63 = vpop.permute.xlu1 %318 }
  0xff   :  { %v333_v0 = vmul.f32 %v319_v63, %v684_v54  ;;  %v381_v17 = vpop.permute.xlu2 %380 }
 0x100   :  { %v313_v19 = vrot.slane %v312_v62, 2  ;;  %v392_v37 = vmul.f32 %v381_v17, %v680_v51 }
 0x101   :  { %v337_v8 = vadd.f32 %v334_v25, %v333_v0 }
 0x102   :  { %v314_v4 = vadd.f32 %v313_v19, %v312_v62  ;;  %v443_v19 = vpop.permute.xlu0 %442 }
 0x103   :  { %v338_v11 = vadd.f32 %v337_v8, %v335_v2 }
 0x104   :  { %v315_v5 = vrot.slane %v314_v4, 1 }
 0x106   :  { %v331_v12 = vpop.permute.xlu1 %330  ;;  %v316_v13 = vadd.f32 %v315_v5, %v314_v4  ;;  %v451_v5 = vmul.f32 %v443_v19, %v695_v6 }
 0x107   :  { %v336_v14 = vmul.f32 %v331_v12, %v674_v44  ;;  %v389_v32 = vpop.permute.xlu2 %388 }
 0x108   :  { %v475_v15 = vsel %vm474_vm5, %v473_v60, %v316_v13  ;;  %v394_v45 = vmul.f32 %v389_v32, %v674_v44 }
 0x109   :  { %v339_v16 = vadd.f32 %v338_v11, %v336_v14 }
 0x10b   :  { %v340_v18 = vrot.slane %v339_v16, 4 }
 0x10d   :  { %v341_v20 = vadd.f32 %v340_v18, %v339_v16 }
 0x10f   :  { %v342_v21 = vrot.slane %v341_v20, 2  ;;  %v352_v1 = vpop.permute.xlu1 %351 }
 0x110   :  { %v363_v23 = vmul.f32 %v352_v1, %v680_v51  ;;  %v435_v41 = vpop.permute.xlu2 %434 }
 0x111   :  { %v343_v26 = vadd.f32 %v342_v21, %v341_v20  ;;  %v449_v3 = vmul.f32 %v435_v41, %v684_v54 }
 0x112   :  { %v366_v28 = vadd.f32 %v363_v23, %v362_v22 }
 0x113   :  { %v344_v29 = vrot.slane %v343_v26, 1 }
 0x114   :  { %v367_v31 = vadd.f32 %v366_v28, %v364_v27 }
 0x115   :  { %v345_v33 = vadd.f32 %v344_v29, %v343_v26 }
 0x116   :  { %v368_v34 = vadd.f32 %v367_v31, %v365_v30 }
 0x117   :  { %v477_v35 = vsel %vm476_vm6, %v475_v15, %v345_v33 }
 0x118   :  { %v377_v36 = vpop.permute.xlu1 %376  ;;  %v369_v40 = vrot.slane %v368_v34, 4 }
 0x119   :  { %v391_v38 = vmul.f32 %v377_v36, %v684_v54  ;;  %v414_v53 = vpop.permute.xlu2 %413 }
 0x11a   :  { %v370_v43 = vadd.f32 %v369_v40, %v368_v34  ;;  %v422_v58 = vmul.f32 %v414_v53, %v695_v6 }
 0x11b   :  { %v395_v39 = vadd.f32 %v392_v37, %v391_v38 }
 0x11c   :  { %v371_v47 = vrot.slane %v370_v43, 2 }
 0x11e   :  { %v372_v52 = vadd.f32 %v371_v47, %v370_v43 }
 0x120   :  { %v385_v42 = vpop.permute.xlu1 %384  ;;  %v373_v61 = vrot.slane %v372_v52, 1 }
 0x121   :  { %v393_v7 = vmul.f32 %v385_v42, %v695_v6 }
 0x122   :  { %v374_v25 = vadd.f32 %v373_v61, %v372_v52  ;;  %v447_v11 = vpop.permute.xlu2 %446 }
 0x123   :  { %v396_v46 = vadd.f32 %v395_v39, %v393_v7  ;;  %v452_v13 = vmul.f32 %v447_v11, %v674_v44 }
 0x125   :  { %v397_v48 = vadd.f32 %v396_v46, %v394_v45 }
 0x127   :  { %v398_v50 = vrot.slane %v397_v48, 4 }
 0x129   :  { %v399_v55 = vadd.f32 %v398_v50, %v397_v48  ;;  %v410_v56 = vpop.permute.xlu1 %409 }
 0x12a   :  { %v421_v9 = vmul.f32 %v410_v56, %v680_v51 }
 0x12b   :  { %v400_v57 = vrot.slane %v399_v55, 2  ;;  %v489_v30 = vpop.permute.xlu2 %488 }
 0x12c   :  { %v424_v59 = vadd.f32 %v421_v9, %v420_v10 }
 0x12d   :  { %v401_v60 = vadd.f32 %v400_v57, %v399_v55 }
 0x12e   :  { %v425_v62 = vadd.f32 %v424_v59, %v422_v58 }
 0x12f   :  { %v402_v63 = vrot.slane %v401_v60, 1 }
 0x131   :  { %v403_v0 = vadd.f32 %v402_v63, %v401_v60 }
 0x132   :  { %v439_v2 = vpop.permute.xlu1 %438 }
 0x133   :  { %v450_v8 = vmul.f32 %v439_v2, %v680_v51  ;;  %v478_v4 = vsel %vm464_vm0, %v374_v25, %v403_v0 }
 0x135   :  { %v453_v12 = vadd.f32 %v450_v8, %v449_v3 }
 0x137   :  { %v454_v14 = vadd.f32 %v453_v12, %v451_v5 }
 0x139   :  { %v455_v15 = vadd.f32 %v454_v14, %v452_v13 }
 0x13b   :  { %v456_v16 = vrot.slane %v455_v15, 4  ;;  %v418_v17 = vpop.permute.xlu1 %417 }
 0x13c   :  { %v423_v18 = vmul.f32 %v418_v17, %v674_v44 }
 0x13d   :  { %v457_v20 = vadd.f32 %v456_v16, %v455_v15 }
 0x13e   :  { %v426_v21 = vadd.f32 %v425_v62, %v423_v18 }
 0x13f   :  { %v458_v1 = vrot.slane %v457_v20, 2 }
 0x140   :  { %v427_v54 = vrot.slane %v426_v21, 4 }
 0x141   :  { %v459_v51 = vadd.f32 %v458_v1, %v457_v20 }
 0x142   :  { %v428_v22 = vadd.f32 %v427_v54, %v426_v21 }
 0x143   :  { %v460_v6 = vrot.slane %v459_v51, 1 }
 0x144   :  { %v429_v23 = vrot.slane %v428_v22, 2  ;;  %v484_v24 = vpop.permute.xlu1 %483 }
 0x145   :  { %v491_v26 = vadd.f32 %v484_v24, %v477_v35  ;;  %v461_v31 = vadd.f32 %v460_v6, %v459_v51 }
 0x146   :  { %v430_v27 = vadd.f32 %v429_v23, %v428_v22 }
 0x147   :  { %493 = vst [vmem:[%s771_s2] sm:$0xff] %v491_v26 }
 0x148   :  { %v431_v28 = vrot.slane %v430_v27, 1 }
 0x14a   :  { %v432_v29 = vadd.f32 %v431_v28, %v430_v27 }
 0x14c   :  { %v479_v44 = vsel %vm466_vm1, %v478_v4, %v432_v29 }
 0x14d   :  { %v480_v32 = vsel %vm468_vm2, %v479_v44, %v461_v31 }
 0x14e   :  { %v492_v33 = vadd.f32 %v489_v30, %v480_v32 }
 0x150   :  { %494 = vst [vmem:[%s771_s2 + $0x8] sm:$0xf] %v492_v33 }
 0x151   :  { %499 = vsyncpa [#allocation3], 1 }

</bundles_post_ra>
